<compile_context>
chip_gen: v6e
topology: v6e:2x2x1
jax: 0.10.0
libtpu: 0.0.40
codegen_flags: <defaults>
</compile_context>

<pallas_src>
import jax
import jax.numpy as jnp
from jax.experimental import pallas as pl
from jax.experimental.pallas import tpu as pltpu

_SLOPE = 0.01  # nn.LeakyReLU() default; also used for the score LeakyReLU.


def _leaky_relu(x, slope=_SLOPE):
    # For 0 < slope < 1, max(x, slope*x) == leaky_relu(x): single VPU vmax.
    return jnp.maximum(x, slope * x)


def att0_kernel(x_ref, wf_ref, bf_ref, em_ref):
    R, D = x_ref.shape          # R = B*N1*N2 flattened rows
    G = em_ref.shape[0]         # G = B*N1 attention groups
    S = R // G                  # set size (N2)

    # ONE lane-dense MXU matmul covers the value projection (lanes [0, D)) and
    # both halves of the concat score projection (lanes D, D+1), biases fused.
    y = jnp.dot(x_ref[...], wf_ref[...],
                preferred_element_type=jnp.float32) + bf_ref[...]    # (R, LANES)
    y3 = y.reshape(G, S, y.shape[-1])                                # (G, S, LANES)

    s_x = y3[:, :, D:D + 1]              # (G, S, 1): x_i @ wax + ba
    s_c = y3[:, 0:1, D + 1:D + 2]        # (G, 1, 1): x_0 @ wac   (center row)
    score = _leaky_relu(s_c + s_x)       # (G, S, 1)

    # Softmax over the set axis; reciprocal on the EUP slot (nearly free).
    m = jnp.max(score, axis=1, keepdims=True)
    e = jnp.exp(score - m)
    inv = pl.reciprocal(jnp.sum(e, axis=1, keepdims=True), approx=True)
    alphas = e * inv                     # (G, S, 1)

    # Weighted sum over the set axis on the full lane-dense slab (extra lanes
    # carry junk the wrapper never reads), then fused epilogue LeakyReLU and a
    # lane-dense 128-wide unmasked store.
    att = jnp.sum(alphas * y3, axis=1)                   # (G, LANES)
    em_ref[...] = _leaky_relu(att).astype(em_ref.dtype)


def fuse_params(params):
    """ONE-TIME pack of value + score projections + biases into a lane-dense
    (D, 128) weight / (1, 128) bias. Call once per model, not per forward."""
    wv, bv, wac, wax, ba = params
    d = wv.shape[0]
    # Keep lanes at 128 for small D: exactly one MXU N-pass on v5e's 128x128 MXU.
    lanes = max(128, pl.cdiv(d + 2, 128) * 128)
    wf = jnp.zeros((d, lanes), jnp.float32)
    wf = wf.at[:, :d].set(wv.astype(jnp.float32))
    wf = wf.at[:, d].set(wax[:, 0].astype(jnp.float32))
    wf = wf.at[:, d + 1].set(wac[:, 0].astype(jnp.float32))
    bf = jnp.zeros((1, lanes), jnp.float32)
    bf = bf.at[:, :d].set(bv.astype(jnp.float32))
    bf = bf.at[:, d].set(ba.astype(jnp.float32)[0, 0])
    return wf, bf


@jax.jit
def att0_1_2layer_forward(embeddings, wf, bf):
    """Replicates att0_1_2layer.forward's returned value (eval mode: dropout =
    identity). The module's second attention layer never contributes to the
    return value, so it is not computed (dead work)."""
    B, N1, N2, D = embeddings.shape
    lanes = wf.shape[1]
    G = B * N1
    R = G * N2
    x2 = embeddings.reshape(R, D)        # flatten in the (jitted) wrapper

    em_slab = pl.pallas_call(
        att0_kernel,
        out_shape=jax.ShapeDtypeStruct((G, lanes), jnp.float32),
        grid_spec=pltpu.PrefetchScalarGridSpec(
            num_scalar_prefetch=0,
            grid=(1,),   # whole problem in one block (~10 KiB total in VMEM)
            in_specs=[
                pl.BlockSpec((R, D), lambda i: (0, 0)),       # flattened embeddings
                pl.BlockSpec((D, lanes), lambda i: (0, 0)),   # fused weight
                pl.BlockSpec((1, lanes), lambda i: (0, 0)),   # fused bias
            ],
            out_specs=pl.BlockSpec((G, lanes), lambda i: (0, 0)),
        ),
        # NOTE: if scaled up, grid over B with ("parallel",) to use both v7x
        # TCs and tile rows over G (multiples of 8*N2) with vmem_limit_bytes.
        compiler_params=pltpu.CompilerParams(
            dimension_semantics=("arbitrary",)),
        cost_estimate=pl.CostEstimate(
            flops=2 * R * D * lanes,
            transcendentals=R,
            bytes_accessed=R * D * 4 + D * lanes * 4 + lanes * 4 + G * lanes * 4),
    )(x2, wf, bf)

    # em_out = LeakyReLU(att_value[:, 1:, :]); nn.Dropout is identity at eval.
    return em_slab.reshape(B, N1, lanes)[:, 1:, :D]


def make_params(key, em_dim):
    """Deterministic Att_cat parameter init (shapes follow Att_cat(act, drop, em_dim))."""
    k1, k2, k3, k4 = jax.random.split(key, 4)
    scale = 1.0 / jnp.sqrt(jnp.float32(em_dim))
    wv = jax.random.normal(k1, (em_dim, em_dim), jnp.float32) * scale   # value Linear(D, D)
    bv = jax.random.normal(k2, (1, em_dim), jnp.float32) * 0.01
    wa = jax.random.normal(k3, (2 * em_dim, 1), jnp.float32) * scale    # score Linear(2D, 1)
    wac, wax = wa[:em_dim, :], wa[em_dim:, :]
    ba = jax.random.normal(k4, (1, 1), jnp.float32) * 0.01
    return wv, bv, wac, wax, ba


def _reference_forward(embeddings, params):
    """Pure-JAX reference of the module's returned value (for correctness)."""
    wv, bv, wac, wax, ba = params

    def att(x):                                 # x: [..., S, D], attend over dim=-2
        value = x @ wv + bv
        s_c = x[..., 0:1, :] @ wac              # [..., 1, 1]
        s_x = x @ wax                           # [..., S, 1]
        score = jax.nn.leaky_relu(s_c + s_x + ba[0, 0], negative_slope=_SLOPE)
        alphas = jax.nn.softmax(score, axis=-2)
        return (alphas * value).sum(axis=-2)

    att_value = att(embeddings)                 # (B, N1, D)
    # Layer 2 of the module does not affect the returned value; omitted here too.
    return jax.nn.leaky_relu(att_value[:, 1:, :], negative_slope=_SLOPE)


if __name__ == "__main__":
    B, N1, N2, D = 2, 4, 8, 32   # batch, outer set, inner set, em_dim
    key = jax.random.PRNGKey(0)
    k_x, k_p = jax.random.split(key)

    embeddings = jax.random.normal(k_x, (B, N1, N2, D), jnp.float32)
    params = make_params(k_p, D)
    wf, bf = fuse_params(params)     # hoisted: packed ONCE per model

    out = jax.block_until_ready(att0_1_2layer_forward(embeddings, wf, bf))
    assert out.shape == (B, N1 - 1, D), out.shape

    ref = _reference_forward(embeddings, params)
    assert jnp.allclose(out, ref, rtol=2e-2, atol=2e-2), float(jnp.max(jnp.abs(out - ref)))

    print("KERNEL_OK")
</pallas_src>

<mosaic_0001>
module attributes {stable_mosaic.version = 11 : i64} {
  func.func @att0_kernel(%arg0: i32, %arg1: memref<64x32xf32, #tpu.memory_space<vmem>>, %arg2: memref<32x128xf32, #tpu.memory_space<vmem>>, %arg3: memref<1x128xf32, #tpu.memory_space<vmem>>, %arg4: memref<8x128xf32, #tpu.memory_space<vmem>>) attributes {dimension_semantics = [#tpu.dimension_semantics<arbitrary>], iteration_bounds = array<i64: 1>, scalar_prefetch = 0 : i64, scratch_operands = 0 : i64, tpu.core_type = #tpu.core_type<tc>, window_params = [{pipeline_mode = #tpu.pipeline_mode<synchronous>, transform_indices = @transform_0, window_bounds = array<i64: 64, 32>}, {pipeline_mode = #tpu.pipeline_mode<synchronous>, transform_indices = @transform_1, window_bounds = array<i64: 32, 128>}, {pipeline_mode = #tpu.pipeline_mode<synchronous>, transform_indices = @transform_2, window_bounds = array<i64: 1, 128>}, {pipeline_mode = #tpu.pipeline_mode<synchronous>, transform_indices = @transform_3, window_bounds = array<i64: 8, 128>}]} {
    %c0 = arith.constant 0 : index
    %c0_0 = arith.constant 0 : index
    %0 = vector.load %arg1[%c0, %c0_0] : memref<64x32xf32, #tpu.memory_space<vmem>>, vector<64x32xf32>
    %c0_1 = arith.constant 0 : index
    %c0_2 = arith.constant 0 : index
    %1 = vector.load %arg2[%c0_1, %c0_2] : memref<32x128xf32, #tpu.memory_space<vmem>>, vector<32x128xf32>
    %cst = arith.constant dense<0.000000e+00> : vector<64x128xf32>
    %2 = tpu.matmul %0, %1, %cst {dimension_numbers = #tpu.dot_dimension_numbers<[1], [0], [0], [1], [0, 0, 1, 1], [], []>} : vector<64x32xf32>, vector<32x128xf32>, vector<64x128xf32> -> vector<64x128xf32>
    %c0_3 = arith.constant 0 : index
    %c0_4 = arith.constant 0 : index
    %3 = vector.load %arg3[%c0_3, %c0_4] : memref<1x128xf32, #tpu.memory_space<vmem>>, vector<1x128xf32>
    %4 = vector.broadcast %3 : vector<1x128xf32> to vector<64x128xf32>
    %5 = arith.addf %2, %4 : vector<64x128xf32>
    %6 = vector.shape_cast %5 : vector<64x128xf32> to vector<8x8x128xf32>
    %7 = vector.extract_strided_slice %6 {offsets = [0, 0, 32], sizes = [8, 8, 1], strides = [1, 1, 1]} : vector<8x8x128xf32> to vector<8x8x1xf32>
    %8 = vector.extract_strided_slice %6 {offsets = [0, 0, 33], sizes = [8, 1, 1], strides = [1, 1, 1]} : vector<8x8x128xf32> to vector<8x1x1xf32>
    %9 = vector.broadcast %8 : vector<8x1x1xf32> to vector<8x8x1xf32>
    %10 = arith.addf %9, %7 : vector<8x8x1xf32>
    %cst_5 = arith.constant 0.00999999977 : f32
    %11 = vector.broadcast %cst_5 : f32 to vector<8x8x1xf32>
    %12 = arith.mulf %11, %10 : vector<8x8x1xf32>
    %13 = arith.maximumf %10, %12 : vector<8x8x1xf32>
    %cst_6 = arith.constant dense<0xFF800000> : vector<8x1xf32>
    %14 = vector.multi_reduction <maximumf>, %13, %cst_6 [1] : vector<8x8x1xf32> to vector<8x1xf32>
    %15 = vector.shape_cast %14 : vector<8x1xf32> to vector<8x1x1xf32>
    %16 = vector.broadcast %15 : vector<8x1x1xf32> to vector<8x8x1xf32>
    %17 = arith.subf %13, %16 : vector<8x8x1xf32>
    %18 = math.exp %17 : vector<8x8x1xf32>
    %cst_7 = arith.constant dense<0.000000e+00> : vector<8x1xf32>
    %19 = vector.multi_reduction <add>, %18, %cst_7 [1] : vector<8x8x1xf32> to vector<8x1xf32>
    %20 = vector.shape_cast %19 : vector<8x1xf32> to vector<8x1x1xf32>
    %21 = tpu.reciprocal %20 {approx = true} : vector<8x1x1xf32> -> vector<8x1x1xf32>
    %22 = vector.broadcast %21 : vector<8x1x1xf32> to vector<8x8x1xf32>
    %23 = arith.mulf %18, %22 : vector<8x8x1xf32>
    %24 = vector.broadcast %23 : vector<8x8x1xf32> to vector<8x8x128xf32>
    %25 = arith.mulf %24, %6 : vector<8x8x128xf32>
    %cst_8 = arith.constant dense<0.000000e+00> : vector<8x128xf32>
    %26 = vector.multi_reduction <add>, %25, %cst_8 [1] : vector<8x8x128xf32> to vector<8x128xf32>
    %cst_9 = arith.constant 0.00999999977 : f32
    %27 = vector.broadcast %cst_9 : f32 to vector<8x128xf32>
    %28 = arith.mulf %27, %26 : vector<8x128xf32>
    %29 = arith.maximumf %26, %28 : vector<8x128xf32>
    %c0_10 = arith.constant 0 : index
    %c0_11 = arith.constant 0 : index
    %30 = vector.load %arg4[%c0_10, %c0_11] : memref<8x128xf32, #tpu.memory_space<vmem>>, vector<8x128xf32>
    tpu.vector_store %arg4[%c0_10, %c0_11], %29 {strides = array<i32>} : memref<8x128xf32, #tpu.memory_space<vmem>>, vector<8x128xf32>,
    return
  }
  func.func @transform_0(%arg0: i32) -> (i32, i32) {
    %c0_i32 = arith.constant 0 : i32
    %c0_i32_0 = arith.constant 0 : i32
    %c0_i32_1 = arith.constant 0 : i32
    return %c0_i32, %c0_i32_0 : i32, i32
  }
  func.func @transform_1(%arg0: i32) -> (i32, i32) {
    %c0_i32 = arith.constant 0 : i32
    %c0_i32_0 = arith.constant 0 : i32
    %c0_i32_1 = arith.constant 0 : i32
    return %c0_i32, %c0_i32_0 : i32, i32
  }
  func.func @transform_2(%arg0: i32) -> (i32, i32) {
    %c0_i32 = arith.constant 0 : i32
    %c0_i32_0 = arith.constant 0 : i32
    %c0_i32_1 = arith.constant 0 : i32
    return %c0_i32, %c0_i32_0 : i32, i32
  }
  func.func @transform_3(%arg0: i32) -> (i32, i32) {
    %c0_i32 = arith.constant 0 : i32
    %c0_i32_0 = arith.constant 0 : i32
    %c0_i32_1 = arith.constant 0 : i32
    return %c0_i32, %c0_i32_0 : i32, i32
  }
}

</mosaic_0001>

<bundles_post_ra>
// kernel: att0_1_2layer_forward.1
= control target key start
LH: loop header
LB: loop body
LE: loop exit
PB: predicated region body
PF: predicated region fallthrough
CT: control target
= control target key end

     0   :  { %8 = vsyncpa [#allocation3], 0  ;;  %s849_s0 = inlined_call_operand.hbm [shape: f32[64,32], index: 0, kind: input, shape index: {}]   ;;  %s850_s1 = inlined_call_operand.hbm [shape: f32[32,128], index: 1, kind: input, shape index: {}]   ;;  %s851_s2 = inlined_call_operand.vmem [shape: f32[1,128], index: 2, kind: input, shape index: {}]   ;;  %s852_s3 = inlined_call_operand.vmem [shape: f32[8,128], index: 3, kind: output, shape index: {}]  }
   0x1   :  { %9 = vsyncpa [#allocation5], 0  ;;  %s707_s12 = smov [#allocation2]  }
   0x2   :  { %s15_s13 = sshll.u32 %s707_s12, 4  ;;  %s16_s13 = int_to_ptr.vmem [resolvable:$true] %s15_s13 }
   0x3   :  { %s671_s14 = scalar_lea.vmem %s16_s13, 1024  ;;  %p676_p1 = scmp.lt.s32.totalorder %s16_s13, %s16_s13 }
   0x4   :  { %p672_p0 = scmp.ne.s32.totalorder %s16_s13, %s671_s14  ;;  %p677_p2 = scmp.lt.s32.totalorder %s671_s14, %s671_s14 }
   0x6   :  { %p678_p3 = por %p677_p2, %p676_p1 }
   0x8   :  { %p679_p4 = pnand %p678_p3, %p672_p0 }
   0xa   :  { %682 = shalt.err (!%p679_p4)
}
   0xb   :  { %s708_s15 = smov 128   ;;  %s709_s16 = smov 8  }
   0xc   :  { %21 = dma.hbm_to_vmem [thread:$0]  %s849_s0, 1024, %s16_s13, [#allocation3], %s708_s15, %s708_s15, %s709_s16  }
   0xd   :  { %s710_s19 = smov [#allocation4]  }
   0xe   :  { %s27_s20 = sshll.u32 %s710_s19, 4  ;;  %s28_s20 = int_to_ptr.vmem [resolvable:$true] %s27_s20 }
   0xf   :  { %s691_s21 = scalar_lea.vmem %s28_s20, 512  ;;  %p696_p6 = scmp.lt.s32.totalorder %s28_s20, %s28_s20 }
  0x10   :  { %p692_p5 = scmp.ne.s32.totalorder %s28_s20, %s691_s21  ;;  %p697_p7 = scmp.lt.s32.totalorder %s691_s21, %s691_s21 }
  0x12   :  { %p698_p8 = por %p697_p7, %p696_p6 }
  0x14   :  { %p699_p9 = pnand %p698_p8, %p692_p5 }
  0x16   :  { %702 = shalt.err (!%p699_p9)
}
  0x17   :  { %33 = dma.hbm_to_vmem [thread:$0]  %s850_s1, 512, %s28_s20, [#allocation5], %s708_s15, %s708_s15, %s709_s16  }
  0x18   :  { %703 = dma.done.wait [#allocation3], 1024  }
  0x19   :  { %704 = vsyncadd [#allocation3], 4294966272 }
  0x1a   :  { %705 = dma.done.wait [#allocation5], 512  }
  0x1b   :  { %706 = vsyncadd [#allocation5], 4294966784  ;;  %v53_v0 = vld [vmem:[#allocation4 + $0x18] sm:$0xff]  ;;  %v52_v1 = vld [vmem:[#allocation4 + $0x10] sm:$0xff]  ;;  %vm61_vm0 = vcmask 261120   ;;  %s711_s24 = smov 1   ;;  %v191_v30 = vlaneseq }
  0x1c   :  { %595 = vmatprep.subr.mxu0 %v53_v0  ;;  %615 = vmatprep.subr.mxu1 %v53_v0  ;;  %v42_v2 = vld [vmem:[#allocation2] sm:$0xff]  ;;  %v51_v3 = vld [vmem:[#allocation4 + $0x8] sm:$0xff]  ;;  %v44_v6 = vld [vmem:[#allocation2 + $0x10] sm:$0xff]  ;;  %v712_v29 = vmov 33   ;;  %vm279_vm1 = vcmask 277768   ;;  %vm552_vm2 = vcmask 1041409  }
  0x1d   :  { %596 = vmatpush3.msra.mxu0 %v53_v0  ;;  %619 = vmatpush3.msra.mxu1 %v53_v0  ;;  %v50_v4 = vld [vmem:[#allocation4] sm:$0xff]  ;;  %v43_v5 = vld [vmem:[#allocation2 + $0x8] sm:$0xff]  ;;  %v48_v9 = vld [vmem:[#allocation2 + $0x30] sm:$0xff]  ;;  %v192_v31 = vshrl.u32 %v191_v30, 7  ;;  %vm554_vm3 = vcmask 1042434   ;;  %vm556_vm4 = vcmask 1043459  }
  0x1e   :  { %597 = vmatprep.subr.mxu0 %v52_v1  ;;  %603 = vmatprep.mubr.msk.f32.mxu0 %vm61_vm0, %v42_v2  ;;  %v46_v7 = vld [vmem:[#allocation2 + $0x20] sm:$0xff]  ;;  %v47_v8 = vld [vmem:[#allocation2 + $0x28] sm:$0xff]  ;;  %v45_v10 = vld [vmem:[#allocation2 + $0x18] sm:$0xff]  ;;  %vm558_vm5 = vcmask 1044484   ;;  %vm560_vm6 = vcmask 1045509   ;;  %vm562_vm7 = vcmask 1046534  }
  0x1f   :  { %598 = vmatpush3.msra.mxu0 %v52_v1  ;;  %616 = vmatprep.subr.mxu1 %v52_v1  ;;  %v49_v11 = vld [vmem:[#allocation2 + $0x38] sm:$0xff]  ;;  %v574_v12 = vld [vmem:[%s851_s2] ss:$0 sm:$0xff]  ;;  %v193_v32 = vsub.s32 0, %v192_v31  ;;  %vm564_vm8 = vcmask 1047559  }
  0x20   :  { %599 = vmatprep.subr.mxu0 %v51_v3  ;;  %620 = vmatpush3.msra.mxu1 %v52_v1 }
  0x21   :  { %600 = vmatpush3.msra.mxu0 %v51_v3  ;;  %617 = vmatprep.subr.mxu1 %v51_v3 }
  0x22   :  { %601 = vmatprep.subr.mxu0 %v50_v4  ;;  %621 = vmatpush3.msra.mxu1 %v51_v3 }
  0x23   :  { %602 = vmatpush3.msra.mxu0 %v50_v4  ;;  %618 = vmatprep.subr.mxu1 %v50_v4 }
  0x24   :  { %604 = vmatmul.mubr.msk.f32.vlgmr.msra.gmra.mxu0 %vm61_vm0, %v43_v5  ;;  %622 = vmatpush3.msra.mxu1 %v50_v4 }
  0x25   :  { %606 = vmatprep.mubr.msk.f32.mxu0 %vm61_vm0, %v44_v6  ;;  %609 = vmatprep.mubr.msk.f32.mxu1 %vm61_vm0, %v46_v7 }
  0x26   :  { %610 = vmatmul.mubr.msk.f32.vlgmr.msra.gmra.mxu1 %vm61_vm0, %v47_v8  ;;  %629 = vset.pattern.permute.xlu1 %v712_v29 }
  0x27   :  { %612 = vmatprep.mubr.msk.f32.mxu1 %vm61_vm0, %v48_v9  ;;  %630 = vset.pattern.permute.xlu0 %v712_v29 }
  0x28   :  { %607 = vmatmul.mubr.msk.f32.gmra.mxu0 %vm61_vm0, %v45_v10 }
  0x2a   :  { %613 = vmatmul.mubr.msk.f32.gmra.mxu1 %vm61_vm0, %v49_v11 }
  0xe4   :  { %v605_v13 = vpop.f32.mrf.mxu0 }
  0xe5   :  { %v750_v14 = vadd.f32 %v605_v13, %v574_v12 }
  0xe6   :  { %v152_v15 = vpop.f32.mrf.mxu0  ;;  %v611_v16 = vpop.f32.mrf.mxu1 }
  0xe7   :  { %233 = vrot.lane.b32.xlu0 %v750_v14, %s711_s24  ;;  %v753_v19 = vadd.f32 %v574_v12, %v152_v15  ;;  %v763_v26 = vadd.f32 %v611_v16, %v574_v12  ;;  %v198_v33 = vrot.slane %v750_v14, %v193_v32 }
  0xe8   :  { %v608_v17 = vpop.f32.mrf.mxu0  ;;  %v172_v18 = vpop.f32.mrf.mxu1 }
  0xe9   :  { %v755_v20 = vadd.f32 %v608_v17, %v574_v12  ;;  %v759_v23 = vadd.f32 %v574_v12, %v172_v18  ;;  %v194_v38 = vrot.slane %v753_v19, %v193_v32  ;;  %v214_v57 = vrot.slane %v763_v26, %v193_v32 }
  0xea   :  { %v162_v21 = vpop.f32.mrf.mxu0  ;;  %v614_v22 = vpop.f32.mrf.mxu1 }
  0xeb   :  { %237 = vrot.lane.b32.xlu1 %v755_v20, %s711_s24  ;;  %231 = vrot.lane.b32.xlu0 %v753_v19, %s711_s24  ;;  %v761_v25 = vadd.f32 %v574_v12, %v162_v21  ;;  %v769_v28 = vadd.f32 %v614_v22, %v574_v12  ;;  %v206_v37 = vrot.slane %v755_v20, %v193_v32 }
  0xec   :  { %v182_v24 = vpop.f32.mrf.mxu1  ;;  %v210_v44 = vrot.slane %v759_v23, %v193_v32 }
  0xed   :  { %v767_v27 = vadd.f32 %v574_v12, %v182_v24  ;;  %v202_v48 = vrot.slane %v761_v25, %v193_v32  ;;  %v222_v11 = vrot.slane %v769_v28, %v193_v32 }
  0xef   :  { %235 = vrot.lane.b32.xlu1 %v761_v25, %s711_s24  ;;  %239 = vrot.lane.b32.xlu0 %v759_v23, %s711_s24  ;;  %v218_v58 = vrot.slane %v767_v27, %v193_v32 }
  0xf3   :  { %241 = vrot.lane.b32.xlu1 %v763_v26, %s711_s24  ;;  %243 = vrot.lane.b32.xlu0 %v767_v27, %s711_s24 }
  0xf7   :  { %245 = vrot.lane.b32.xlu1 %v769_v28, %s711_s24 }
 0x159   :  { %v234_v34 = vpop.permute.xlu0 %233 }
 0x15a   :  { %v256_v35 = vadd.f32 %v234_v34, %v198_v33 }
 0x15c   :  { %v264_v36 = vmul.f32 0.01, %v256_v35 }
 0x15d   :  { %v238_v39 = vpop.permute.xlu1 %237  ;;  %v232_v40 = vpop.permute.xlu0 %231 }
 0x15e   :  { %v777_v41 = vmax.f32 %v256_v35, %v264_v36  ;;  %v258_v42 = vadd.f32 %v238_v39, %v206_v37  ;;  %v255_v43 = vadd.f32 %v232_v40, %v194_v38 }
 0x160   :  { %v287_v45 = vsel %vm279_vm1, %v777_v41, -inf  ;;  %v266_v46 = vmul.f32 0.01, %v258_v42  ;;  %v263_v47 = vmul.f32 0.01, %v255_v43 }
 0x161   :  { %v288_v49 = vrot.slane %v287_v45, 4  ;;  %v236_v50 = vpop.permute.xlu1 %235  ;;  %v240_v51 = vpop.permute.xlu0 %239 }
 0x162   :  { %v783_v52 = vmax.f32 %v258_v42, %v266_v46  ;;  %v785_v53 = vmax.f32 %v255_v43, %v263_v47  ;;  %v257_v54 = vadd.f32 %v236_v50, %v202_v48  ;;  %v259_v55 = vadd.f32 %v240_v51, %v210_v44 }
 0x163   :  { %v289_v56 = vmax.f32 %v287_v45, %v288_v49 }
 0x164   :  { %v301_v59 = vsel %vm279_vm1, %v783_v52, -inf  ;;  %v280_v60 = vsel %vm279_vm1, %v785_v53, -inf  ;;  %v265_v61 = vmul.f32 0.01, %v257_v54  ;;  %v267_v62 = vmul.f32 0.01, %v259_v55 }
 0x165   :  { %v290_v63 = vrot.slane %v289_v56, 2  ;;  %v302_v0 = vrot.slane %v301_v59, 4  ;;  %v281_v1 = vrot.slane %v280_v60, 4  ;;  %v242_v2 = vpop.permute.xlu1 %241  ;;  %v244_v3 = vpop.permute.xlu0 %243 }
 0x166   :  { %v793_v4 = vmax.f32 %v257_v54, %v265_v61  ;;  %v795_v5 = vmax.f32 %v259_v55, %v267_v62  ;;  %v260_v6 = vadd.f32 %v242_v2, %v214_v57  ;;  %v261_v7 = vadd.f32 %v244_v3, %v218_v58 }
 0x167   :  { %v291_v8 = vmax.f32 %v289_v56, %v290_v63  ;;  %v303_v9 = vmax.f32 %v301_v59, %v302_v0  ;;  %v282_v10 = vmax.f32 %v280_v60, %v281_v1 }
 0x168   :  { %v294_v12 = vsel %vm279_vm1, %v793_v4, -inf  ;;  %v308_v13 = vsel %vm279_vm1, %v795_v5, -inf  ;;  %v268_v15 = vmul.f32 0.01, %v260_v6  ;;  %v269_v16 = vmul.f32 0.01, %v261_v7 }
 0x169   :  { %v292_v17 = vrot.slane %v291_v8, 1  ;;  %v304_v18 = vrot.slane %v303_v9, 2  ;;  %v283_v21 = vrot.slane %v282_v10, 2  ;;  %v295_v22 = vrot.slane %v294_v12, 4  ;;  %v246_v24 = vpop.permute.xlu1 %245 }
 0x16a   :  { %v309_v29 = vrot.slane %v308_v13, 4  ;;  %v276_v30 = vmax.f32 %v260_v6, %v268_v15  ;;  %v277_v31 = vmax.f32 %v261_v7, %v269_v16  ;;  %v262_v33 = vadd.f32 %v246_v24, %v222_v11 }
 0x16b   :  { %v293_v34 = vmax.f32 %v291_v8, %v292_v17  ;;  %v305_v35 = vmax.f32 %v303_v9, %v304_v18  ;;  %v284_v32 = vmax.f32 %v282_v10, %v283_v21  ;;  %v296_v36 = vmax.f32 %v294_v12, %v295_v22 }
 0x16c   :  { %v310_v37 = vmax.f32 %v308_v13, %v309_v29  ;;  %v315_v38 = vsel %vm279_vm1, %v276_v30, -inf  ;;  %v322_v39 = vsel %vm279_vm1, %v277_v31, -inf  ;;  %v270_v40 = vmul.f32 0.01, %v262_v33 }
 0x16d   :  { %v337_v42 = vsub.f32 %v777_v41, %v293_v34  ;;  %v306_v43 = vrot.slane %v305_v35, 1  ;;  %v285_v44 = vrot.slane %v284_v32, 1  ;;  %v297_v45 = vrot.slane %v296_v36, 2 }
 0x16e   :  { %v311_v46 = vrot.slane %v310_v37, 2  ;;  %v316_v47 = vrot.slane %v315_v38, 4  ;;  %v323_v48 = vrot.slane %v322_v39, 4  ;;  %v278_v49 = vmax.f32 %v262_v33, %v270_v40 }
 0x16f   :  { %v346_v50 = vmul.f32 1.442695, %v337_v42  ;;  %v307_v51 = vmax.f32 %v305_v35, %v306_v43  ;;  %v286_v54 = vmax.f32 %v284_v32, %v285_v44  ;;  %v298_v55 = vmax.f32 %v296_v36, %v297_v45 }
 0x170   :  { %v312_v56 = vmax.f32 %v310_v37, %v311_v46  ;;  %v317_v57 = vmax.f32 %v315_v38, %v316_v47  ;;  %v324_v58 = vmax.f32 %v322_v39, %v323_v48  ;;  %v329_v59 = vsel %vm279_vm1, %v278_v49, -inf }
 0x171   :  { %631 = vpow2.f32 %v346_v50  ;;  %v339_v60 = vsub.f32 %v783_v52, %v307_v51  ;;  %v336_v41 = vsub.f32 %v785_v53, %v286_v54  ;;  %v299_v61 = vrot.slane %v298_v55, 1 }
 0x172   :  { %v313_v62 = vrot.slane %v312_v56, 1  ;;  %v318_v63 = vrot.slane %v317_v57, 2  ;;  %v325_v0 = vrot.slane %v324_v58, 2  ;;  %v330_v1 = vrot.slane %v329_v59, 4 }
 0x173   :  { %v350_v2 = vmul.f32 1.442695, %v339_v60  ;;  %v344_v3 = vmul.f32 1.442695, %v336_v41  ;;  %v300_v6 = vmax.f32 %v298_v55, %v299_v61 }
 0x174   :  { %v314_v7 = vmax.f32 %v312_v56, %v313_v62  ;;  %v319_v8 = vmax.f32 %v317_v57, %v318_v63  ;;  %v326_v9 = vmax.f32 %v324_v58, %v325_v0  ;;  %v331_v10 = vmax.f32 %v329_v59, %v330_v1 }
 0x175   :  { %633 = vpow2.f32 %v350_v2  ;;  %v338_v11 = vsub.f32 %v793_v4, %v300_v6 }
 0x176   :  { %635 = vpow2.f32 %v344_v3  ;;  %v340_v52 = vsub.f32 %v795_v5, %v314_v7  ;;  %v320_v12 = vrot.slane %v319_v8, 1  ;;  %v327_v53 = vrot.slane %v326_v9, 1 }
 0x177   :  { %v348_v13 = vmul.f32 1.442695, %v338_v11  ;;  %v332_v15 = vrot.slane %v331_v10, 2 }
 0x178   :  { %v352_v16 = vmul.f32 1.442695, %v340_v52  ;;  %v321_v17 = vmax.f32 %v319_v8, %v320_v12  ;;  %v328_v18 = vmax.f32 %v326_v9, %v327_v53 }
 0x179   :  { %637 = vpow2.f32 %v348_v13  ;;  %v333_v21 = vmax.f32 %v331_v10, %v332_v15 }
 0x17a   :  { %639 = vpow2.f32 %v352_v16  ;;  %v341_v22 = vsub.f32 %v276_v30, %v321_v17  ;;  %v342_v24 = vsub.f32 %v277_v31, %v328_v18 }
 0x17b   :  { %v334_v29 = vrot.slane %v333_v21, 1 }
 0x17c   :  { %v354_v33 = vmul.f32 1.442695, %v341_v22  ;;  %v356_v34 = vmul.f32 1.442695, %v342_v24 }
 0x17d   :  { %v335_v35 = vmax.f32 %v333_v21, %v334_v29 }
 0x17e   :  { %v810_v4 = vpop.eup %631  ;;  %641 = vpow2.f32 %v354_v33 }
 0x17f   :  { %v367_v5 = vsel %vm279_vm1, %v810_v4, 0.0  ;;  %643 = vpow2.f32 %v356_v34  ;;  %v343_v32 = vsub.f32 %v278_v49, %v335_v35 }
 0x180   :  { %v368_v36 = vrot.slane %v367_v5, 4 }
 0x181   :  { %v358_v37 = vmul.f32 1.442695, %v343_v32 }
 0x182   :  { %v814_v38 = vpop.eup %633  ;;  %v369_v39 = vadd.f32 %v368_v36, %v367_v5 }
 0x183   :  { %v816_v40 = vpop.eup %635  ;;  %645 = vpow2.f32 %v358_v37  ;;  %v381_v30 = vsel %vm279_vm1, %v814_v38, 0.0 }
 0x184   :  { %v360_v31 = vsel %vm279_vm1, %v816_v40, 0.0  ;;  %v370_v42 = vrot.slane %v369_v39, 2  ;;  %v382_v47 = vrot.slane %v381_v30, 4 }
 0x185   :  { %v361_v43 = vrot.slane %v360_v31, 4 }
 0x186   :  { %v822_v44 = vpop.eup %637  ;;  %v371_v45 = vadd.f32 %v370_v42, %v369_v39  ;;  %v383_v60 = vadd.f32 %v382_v47, %v381_v30 }
 0x187   :  { %v824_v46 = vpop.eup %639  ;;  %v362_v48 = vadd.f32 %v361_v43, %v360_v31  ;;  %v374_v49 = vsel %vm279_vm1, %v822_v44, 0.0 }
 0x188   :  { %v375_v50 = vrot.slane %v374_v49, 4  ;;  %v388_v51 = vsel %vm279_vm1, %v824_v46, 0.0  ;;  %v372_v54 = vrot.slane %v371_v45, 1  ;;  %v384_v10 = vrot.slane %v383_v60, 2 }
 0x189   :  { %v389_v55 = vrot.slane %v388_v51, 4  ;;  %v363_v58 = vrot.slane %v362_v48, 2 }
 0x18a   :  { %v376_v56 = vadd.f32 %v375_v50, %v374_v49  ;;  %v373_v57 = vadd.f32 %v372_v54, %v371_v45  ;;  %v385_v29 = vadd.f32 %v384_v10, %v383_v60 }
 0x18b   :  { %v642_v59 = vpop.eup %641  ;;  %v390_v41 = vadd.f32 %v389_v55, %v388_v51  ;;  %v364_v7 = vadd.f32 %v363_v58, %v362_v48 }
 0x18c   :  { %v644_v61 = vpop.eup %643  ;;  %v395_v62 = vsel %vm279_vm1, %v642_v59, 0.0  ;;  %647 = vrcp.f32 %v373_v57  ;;  %v377_v63 = vrot.slane %v376_v56, 2  ;;  %v386_v39 = vrot.slane %v385_v29, 1 }
 0x18d   :  { %v396_v0 = vrot.slane %v395_v62, 4  ;;  %v402_v1 = vsel %vm279_vm1, %v644_v61, 0.0  ;;  %v391_v2 = vrot.slane %v390_v41, 2  ;;  %v365_v18 = vrot.slane %v364_v7, 1 }
 0x18e   :  { %v403_v3 = vrot.slane %v402_v1, 4  ;;  %v378_v6 = vadd.f32 %v377_v63, %v376_v56  ;;  %v387_v45 = vadd.f32 %v386_v39, %v385_v29 }
 0x18f   :  { %v397_v8 = vadd.f32 %v396_v0, %v395_v62  ;;  %v392_v9 = vadd.f32 %v391_v2, %v390_v41  ;;  %v366_v32 = vadd.f32 %v365_v18, %v364_v7 }
 0x190   :  { %v646_v11 = vpop.eup %645  ;;  %v404_v52 = vadd.f32 %v403_v3, %v402_v1  ;;  %v379_v12 = vrot.slane %v378_v6, 1 }
 0x191   :  { %v409_v53 = vsel %vm279_vm1, %v646_v11, 0.0  ;;  %v393_v13 = vrot.slane %v392_v9, 1  ;;  %v398_v15 = vrot.slane %v397_v8, 2 }
 0x192   :  { %v410_v16 = vrot.slane %v409_v53, 4  ;;  %v405_v17 = vrot.slane %v404_v52, 2  ;;  %v380_v24 = vadd.f32 %v379_v12, %v378_v6 }
 0x193   :  { %v394_v21 = vadd.f32 %v393_v13, %v392_v9  ;;  %v399_v22 = vadd.f32 %v398_v15, %v397_v8 }
 0x194   :  { %v411_v33 = vadd.f32 %v410_v16, %v409_v53  ;;  %v406_v34 = vadd.f32 %v405_v17, %v404_v52 }
 0x195   :  { %649 = vrcp.f32 %v394_v21  ;;  %v400_v35 = vrot.slane %v399_v22, 1 }
 0x196   :  { %v407_v5 = vrot.slane %v406_v34, 1  ;;  %v412_v36 = vrot.slane %v411_v33, 2  ;;  %651 = vrcp.f32 %v380_v24 }
 0x197   :  { %v401_v37 = vadd.f32 %v400_v35, %v399_v22 }
 0x198   :  { %v408_v30 = vadd.f32 %v407_v5, %v406_v34  ;;  %v413_v31 = vadd.f32 %v412_v36, %v411_v33 }
 0x199   :  { %v648_v42 = vpop.eup %647  ;;  %653 = vrcp.f32 %v401_v37 }
 0x19a   :  { %v425_v43 = vmul.f32 %v648_v42, %v810_v4  ;;  %655 = vrcp.f32 %v366_v32  ;;  %v414_v47 = vrot.slane %v413_v31, 1 }
 0x19b   :  { %657 = vrcp.f32 %v408_v30 }
 0x19c   :  { %439 = vperm.xlu1 %629, %v425_v43   ;;  %659 = vrcp.f32 %v387_v45  ;;  %v415_v48 = vadd.f32 %v414_v47, %v413_v31 }
 0x19e   :  { %661 = vrcp.f32 %v415_v48 }
 0x1a2   :  { %v650_v49 = vpop.eup %649 }
 0x1a3   :  { %v428_v50 = vmul.f32 %v650_v49, %v824_v46  ;;  %v652_v51 = vpop.eup %651 }
 0x1a4   :  { %v426_v57 = vmul.f32 %v652_v51, %v822_v44 }
 0x1a5   :  { %454 = vperm.xlu1 %629, %v428_v50  }
 0x1a6   :  { %v654_v54 = vpop.eup %653 }
 0x1a7   :  { %v656_v55 = vpop.eup %655  ;;  %v429_v56 = vmul.f32 %v654_v54, %v642_v59 }
 0x1a8   :  { %v658_v58 = vpop.eup %657  ;;  %v424_v60 = vmul.f32 %v656_v55, %v816_v40 }
 0x1a9   :  { %459 = vperm.xlu0 %630, %v429_v56   ;;  %444 = vperm.xlu1 %629, %v426_v57   ;;  %v430_v4 = vmul.f32 %v658_v58, %v644_v61  ;;  %v660_v41 = vpop.eup %659 }
 0x1aa   :  { %v427_v62 = vmul.f32 %v660_v41, %v814_v38 }
 0x1ab   :  { %v662_v46 = vpop.eup %661 }
 0x1ac   :  { %v431_v63 = vmul.f32 %v662_v46, %v646_v11 }
 0x1ad   :  { %464 = vperm.xlu1 %629, %v430_v4   ;;  %434 = vperm.xlu0 %630, %v424_v60  }
 0x1b1   :  { %449 = vperm.xlu0 %630, %v427_v62  }
 0x1b5   :  { %469 = vperm.xlu0 %630, %v431_v63  }
 0x217   :  { %v440_v0 = vpop.permute.xlu1 %439 }
 0x218   :  { %v473_v59 = vmul.f32 %v440_v0, %v750_v14 }
 0x21a   :  { %v486_v1 = vrot.slane %v473_v59, 4 }
 0x21c   :  { %v487_v3 = vadd.f32 %v486_v1, %v473_v59 }
 0x21e   :  { %v488_v38 = vrot.slane %v487_v3, 2 }
 0x220   :  { %v455_v44 = vpop.permute.xlu1 %454  ;;  %v489_v15 = vadd.f32 %v488_v38, %v487_v3 }
 0x221   :  { %v476_v2 = vmul.f32 %v455_v44, %v759_v23 }
 0x222   :  { %v490_v29 = vrot.slane %v489_v15, 1 }
 0x223   :  { %v504_v61 = vrot.slane %v476_v2, 4 }
 0x224   :  { %v445_v6 = vpop.permute.xlu1 %444  ;;  %v460_v40 = vpop.permute.xlu0 %459  ;;  %v491_v30 = vadd.f32 %v490_v29, %v489_v15 }
 0x225   :  { %v474_v7 = vmul.f32 %v445_v6, %v761_v25  ;;  %v477_v8 = vmul.f32 %v460_v40, %v763_v26  ;;  %v505_v9 = vadd.f32 %v504_v61, %v476_v2 }
 0x226   :  { %v529_v54 = vmul.f32 0.01, %v491_v30 }
 0x227   :  { %v492_v10 = vrot.slane %v474_v7, 4  ;;  %v510_v11 = vrot.slane %v477_v8, 4  ;;  %v506_v16 = vrot.slane %v505_v9, 2 }
 0x228   :  { %v465_v52 = vpop.permute.xlu1 %464  ;;  %v435_v12 = vpop.permute.xlu0 %434 }
 0x229   :  { %v493_v53 = vadd.f32 %v492_v10, %v474_v7  ;;  %v511_v14 = vadd.f32 %v510_v11, %v477_v8  ;;  %v478_v13 = vmul.f32 %v465_v52, %v767_v27  ;;  %v472_v23 = vmul.f32 %v435_v12, %v753_v19 }
 0x22a   :  { %v507_v35 = vadd.f32 %v506_v16, %v505_v9 }
 0x22b   :  { %v494_v17 = vrot.slane %v493_v53, 2  ;;  %v516_v18 = vrot.slane %v478_v13, 4  ;;  %v512_v21 = vrot.slane %v511_v14, 2  ;;  %v480_v25 = vrot.slane %v472_v23, 4 }
 0x22c   :  { %v450_v22 = vpop.permute.xlu0 %449  ;;  %v508_v45 = vrot.slane %v507_v35, 1 }
 0x22d   :  { %v495_v26 = vadd.f32 %v494_v17, %v493_v53  ;;  %v517_v24 = vadd.f32 %v516_v18, %v478_v13  ;;  %v481_v33 = vadd.f32 %v480_v25, %v472_v23  ;;  %v475_v34 = vmul.f32 %v450_v22, %v755_v20 }
 0x22e   :  { %v513_v32 = vadd.f32 %v512_v21, %v511_v14  ;;  %v509_v58 = vadd.f32 %v508_v45, %v507_v35 }
 0x22f   :  { %v518_v5 = vrot.slane %v517_v24, 2  ;;  %v482_v36 = vrot.slane %v481_v33, 2  ;;  %v498_v27 = vrot.slane %v475_v34, 4  ;;  %v496_v39 = vrot.slane %v495_v26, 1 }
 0x230   :  { %v470_v37 = vpop.permute.xlu0 %469  ;;  %v514_v47 = vrot.slane %v513_v32, 1  ;;  %v532_v44 = vmul.f32 0.01, %v509_v58 }
 0x231   :  { %v519_v19 = vadd.f32 %v518_v5, %v517_v24  ;;  %v483_v31 = vadd.f32 %v482_v36, %v481_v33  ;;  %v499_v42 = vadd.f32 %v498_v27, %v475_v34  ;;  %v479_v43 = vmul.f32 %v470_v37, %v769_v28 }
 0x232   :  { %v497_v51 = vadd.f32 %v496_v39, %v495_v26  ;;  %v515_v4 = vadd.f32 %v514_v47, %v513_v32  ;;  %v537_v28 = vmax.f32 %v491_v30, %v529_v54  ;;  %v540_v9 = vmax.f32 %v509_v58, %v532_v44 }
 0x233   :  { %v484_v48 = vrot.slane %v483_v31, 1  ;;  %v500_v49 = vrot.slane %v499_v42, 2  ;;  %v522_v50 = vrot.slane %v479_v43, 4  ;;  %v520_v20 = vrot.slane %v519_v19, 1 }
 0x234   :  { %v530_v46 = vmul.f32 0.01, %v497_v51  ;;  %v533_v2 = vmul.f32 0.01, %v515_v4 }
 0x235   :  { %v485_v55 = vadd.f32 %v484_v48, %v483_v31  ;;  %v501_v56 = vadd.f32 %v500_v49, %v499_v42  ;;  %v523_v57 = vadd.f32 %v522_v50, %v479_v43  ;;  %v521_v63 = vadd.f32 %v520_v20, %v519_v19 }
 0x236   :  { %v538_v40 = vmax.f32 %v497_v51, %v530_v46  ;;  %v541_v11 = vmax.f32 %v515_v4, %v533_v2 }
 0x237   :  { %v528_v60 = vmul.f32 0.01, %v485_v55  ;;  %v502_v41 = vrot.slane %v501_v56, 1  ;;  %v524_v62 = vrot.slane %v523_v57, 2  ;;  %v534_v7 = vmul.f32 0.01, %v521_v63 }
 0x239   :  { %v536_v0 = vmax.f32 %v485_v55, %v528_v60  ;;  %v503_v59 = vadd.f32 %v502_v41, %v501_v56  ;;  %v525_v1 = vadd.f32 %v524_v62, %v523_v57  ;;  %v542_v53 = vmax.f32 %v521_v63, %v534_v7 }
 0x23b   :  { %v553_v3 = vsel %vm552_vm2, %v537_v28, %v536_v0  ;;  %v531_v61 = vmul.f32 0.01, %v503_v59  ;;  %v526_v6 = vrot.slane %v525_v1, 1 }
 0x23c   :  { %v555_v10 = vsel %vm554_vm3, %v538_v40, %v553_v3 }
 0x23d   :  { %v539_v8 = vmax.f32 %v503_v59, %v531_v61  ;;  %v527_v38 = vadd.f32 %v526_v6, %v525_v1 }
 0x23f   :  { %v557_v52 = vsel %vm556_vm4, %v539_v8, %v555_v10  ;;  %v535_v12 = vmul.f32 0.01, %v527_v38 }
 0x240   :  { %v559_v14 = vsel %vm558_vm5, %v540_v9, %v557_v52 }
 0x241   :  { %v561_v13 = vsel %vm560_vm6, %v541_v11, %v559_v14  ;;  %v543_v15 = vmax.f32 %v527_v38, %v535_v12 }
 0x242   :  { %v563_v23 = vsel %vm562_vm7, %v542_v53, %v561_v13 }
 0x243   :  { %v565_v16 = vsel %vm564_vm8, %v543_v15, %v563_v23 }
 0x244   :  { %567 = vst [vmem:[%s852_s3] sm:$0xff] %v565_v16 }
 0x245   :  { %572 = vsyncpa [#allocation3], 1 }
 0x246   :  { %573 = vsyncpa [#allocation5], 1 }

</bundles_post_ra>
